<compile_context>
chip_gen: v7x
topology: tpu7x:2x2x1
jax: 0.10.0
libtpu: 0.0.40
codegen_flags: <defaults>
</compile_context>

<pallas_src>
import functools

import numpy as np
import jax
import jax.numpy as jnp
from jax.experimental import pallas as pl
from jax.experimental.pallas import tpu as pltpu


# ---------------------------------------------------------------------------
# Init-time glue: truncated impulse response h (same math as the PyTorch
# module's numpy loop in __init__).
# ---------------------------------------------------------------------------
def compute_impulse_response(b, a, ir_length):
    b = np.asarray(b, dtype=np.float64)
    a = np.asarray(a, dtype=np.float64)
    assert 1 <= ir_length
    d = np.zeros(max(len(b), len(a)))
    h = np.empty(ir_length)
    a0 = a[0]
    a1 = a[1:]
    for t in range(ir_length):
        x = a0 if t == 0 else 0.0
        y = x - np.sum(d[: len(a1)] * a1)
        d = np.roll(d, 1)
        d[0] = y
        y = np.sum(d[: len(b)] * b)
        h[t] = y
    # The PyTorch module stores h flipped and uses F.conv1d (cross-correlation)
    # with left pad (L-1); identical to the causal convolution with the
    # unflipped h implemented below.
    return h


def _round_up(x, m):
    return ((x + m - 1) // m) * m


# ---------------------------------------------------------------------------
# Host-side: banded Toeplitz tap matrices so the convolution becomes MXU work.
#   main : hm_main[i, n] = h[n - i]              (taps inside the sub-block)
#   halo : hm_halo[i, n] = h[n + halo - i]       (taps from the preceding
#                                                 `halo` columns; only the
#                                                 first w_h = min(n_sub, halo)
#                                                 output columns are nonzero)
# ---------------------------------------------------------------------------
def _build_filter_mats(h, halo, n_sub, dtype):
    h = np.asarray(h, dtype=np.float64)
    L = h.shape[0]
    w_h = min(n_sub, halo)

    i = np.arange(n_sub)[:, None]
    n = np.arange(n_sub)[None, :]
    k = n - i
    hm_main = np.where((k >= 0) & (k < L), h[np.clip(k, 0, L - 1)], 0.0)

    i = np.arange(halo)[:, None]
    n = np.arange(w_h)[None, :]
    k = n + halo - i
    hm_halo = np.where((k >= 0) & (k < L), h[np.clip(k, 0, L - 1)], 0.0)

    return jnp.asarray(hm_halo, dtype=dtype), jnp.asarray(hm_main, dtype=dtype)


# ---------------------------------------------------------------------------
# Per-generation knobs (best effort; conservative defaults for v7x / unknown).
# ---------------------------------------------------------------------------
def _device_caps():
    try:
        kind = jax.devices()[0].device_kind.lower()
    except Exception:
        kind = ""
    wide_mxu = ("v6" in kind) or ("v7" in kind) or ("7x" in kind)
    if "v6" in kind:
        # 128 MiB physical VMEM, 32 MiB scoped default -> larger tiles + raised limit.
        return dict(wide_mxu=True, t_cap=4096, b_cap=256,
                    vmem_budget=24 << 20, vmem_limit=64 << 20, vmem_cap=100 << 20)
    if ("v5" in kind) or ("v4" in kind) or ("v3" in kind) or ("v2" in kind):
        # v5e: 16 MiB scoped default, 128 MiB physical; 128-wide MXU.
        return dict(wide_mxu=False, t_cap=2048, b_cap=256,
                    vmem_budget=12 << 20, vmem_limit=32 << 20, vmem_cap=100 << 20)
    # v7x / unknown: only 64 MiB physical VMEM per TensorCore -> stay tight.
    return dict(wide_mxu=wide_mxu, t_cap=2048, b_cap=256,
                vmem_budget=12 << 20, vmem_limit=32 << 20, vmem_cap=48 << 20)


def _choose_t_tile(T, halo, t_cap):
    """Multiple of `halo` minimizing round_up(T, t)*(1 + halo/t)."""
    t_cap = max(halo, (t_cap // halo) * halo)
    best_t, best_cost = halo, None
    k = 1
    while k * halo <= t_cap:
        t = k * halo
        cost = _round_up(T, t) * (1.0 + halo / t)
        if (best_cost is None or cost < best_cost - 1e-9
                or (abs(cost - best_cost) <= 1e-9 and t > best_t)):
            best_cost, best_t = cost, t
        k += 1
    return best_t


def _choose_b_tile(B, b_cap):
    """Multiple of 8 minimizing padded rows; tie-break towards the largest tile."""
    bp8 = _round_up(max(B, 1), 8)
    best_bt, best_pad = 8, _round_up(B, 8)
    for bt in range(8, min(b_cap, bp8) + 1, 8):
        pad = _round_up(B, bt)
        if pad < best_pad or (pad == best_pad and bt > best_bt):
            best_pad, best_bt = pad, bt
    return best_bt


# ---------------------------------------------------------------------------
# Pallas kernel: one (b_tile, t_tile) output block per grid point.
#   hm_halo_ref : VMEM (halo, w_h)      halo-tap Toeplitz block (resident)
#   hm_main_ref : VMEM (n_sub, n_sub)   main-tap Toeplitz block (resident)
#   halo_ref    : VMEM (b_tile, halo)   last `halo` columns of previous time tile
#   x_ref       : VMEM (b_tile, t_tile) current time tile
#   y_ref       : VMEM (b_tile, t_tile) output tile
# ---------------------------------------------------------------------------
def _fir_kernel(hm_halo_ref, hm_main_ref, halo_ref, x_ref, y_ref, *,
                n_sub, halo, t_tile, t_total, cdt):
    j = pl.program_id(1)                       # time-tile index
    num_sub = t_tile // n_sub
    s0 = -(-halo // n_sub)                     # leading sub-blocks touching halo_ref
    w_h = hm_halo_ref.shape[1]                 # min(n_sub, halo)

    hm_main = hm_main_ref[...]
    hm_halo = hm_halo_ref[...]

    use_prev = j > 0                           # first time tile has no left context

    # Static raggedness info: only one sub-block (the one straddling T) can mix
    # garbage columns into valid outputs and needs masking.
    rem = t_total % t_tile
    boundary_sub = (rem // n_sub) if (rem % n_sub) else -1

    for s in range(num_sub):
        lo = s * n_sub
        hi = lo + n_sub

        xm = x_ref[:, lo:hi].astype(cdt)
        if s == boundary_sub:
            col = (jax.lax.broadcasted_iota(jnp.int32, (1, n_sub), 1)
                   + j * t_tile + lo)
            xm = jnp.where(col < t_total, xm, jnp.zeros_like(xm))
        acc = jnp.dot(xm, hm_main, preferred_element_type=jnp.float32)

        if s < s0:
            # Part (or all) of the halo window comes from the previous tile's tail.
            hstart = lo                        # first column of halo_ref we need
            hlen = halo - hstart               # columns taken from halo_ref
            hc = jnp.dot(halo_ref[:, hstart:].astype(cdt), hm_halo[:hlen, :],
                         preferred_element_type=jnp.float32)
            # Select (not multiply): garbage/NaN on the very first tile is discarded.
            hc = jnp.where(use_prev, hc, jnp.zeros_like(hc))
            if hstart > 0:                     # remainder comes from this tile's head
                hc = hc + jnp.dot(x_ref[:, :hstart].astype(cdt), hm_halo[hlen:, :],
                                  preferred_element_type=jnp.float32)
        else:
            hc = jnp.dot(x_ref[:, lo - halo:lo].astype(cdt), hm_halo,
                         preferred_element_type=jnp.float32)

        if w_h == n_sub:
            y_ref[:, lo:hi] = (acc + hc).astype(y_ref.dtype)
        else:
            # Halo taps only touch the first w_h output columns (halo-split).
            y_ref[:, lo:lo + w_h] = (acc[:, :w_h] + hc).astype(y_ref.dtype)
            y_ref[:, lo + w_h:hi] = acc[:, w_h:].astype(y_ref.dtype)


# ---------------------------------------------------------------------------
# Wrapper: tiling, halo BlockSpecs, dtype handling.
# ---------------------------------------------------------------------------
def _fir_filter(x, h, bf16_compute=False):
    orig_shape = x.shape
    orig_dtype = x.dtype
    T = int(orig_shape[-1])
    x2 = jnp.reshape(x, (-1, T))
    B = int(x2.shape[0])

    if x2.dtype == jnp.bfloat16:
        io_dtype, cdt = jnp.bfloat16, jnp.bfloat16   # taps quantized to bf16; f32 accum
    else:
        io_dtype = jnp.float32
        cdt = jnp.bfloat16 if bf16_compute else jnp.float32
        if x2.dtype != jnp.float32:
            # TODO(synk): integer inputs are promoted to f32 and stay f32
            # (matches F.conv1d, which requires float input).
            x2 = x2.astype(jnp.float32)

    caps = _device_caps()
    L = int(np.asarray(h).shape[0])
    halo = max(_round_up(max(L - 1, 1), 128), 128)   # lane-aligned causal context

    t_tile = _choose_t_tile(T, halo, caps["t_cap"])
    b_tile = _choose_b_tile(B, caps["b_cap"])

    grid_b = -(-B // b_tile)
    n_tt = -(-T // t_tile)

    # If everything collapsed to one grid step, split the time axis so both
    # TensorCores / megacore halves get work (no extra padded columns allowed).
    if grid_b * n_tt == 1 and T >= 1024:
        for k in range(t_tile // halo - 1, 0, -1):
            t2 = k * halo
            if -(-T // t2) >= 2 and _round_up(T, t2) <= _round_up(T, t_tile):
                t_tile = t2
                break
        n_tt = -(-T // t_tile)

    n_sub = 256 if (caps["wide_mxu"] and t_tile % 256 == 0) else 128
    w_h = min(n_sub, halo)

    isz = jnp.dtype(io_dtype).itemsize
    csz = jnp.dtype(cdt).itemsize

    def _vmem_est(bt, tt):
        mats = 2 * (halo * w_h + n_sub * n_sub) * csz     # double-buffered taps
        return mats + 2 * bt * halo * isz + 4 * bt * tt * isz

    # Guard for huge ir_length / big tiles: shrink b_tile into the budget.
    while _vmem_est(b_tile, t_tile) > caps["vmem_budget"] and b_tile > 8:
        b_tile = max(8, _round_up(b_tile // 2, 8))
    grid_b = -(-B // b_tile)

    est = _vmem_est(b_tile, t_tile)
    vmem_limit = int(min(max(caps["vmem_limit"], est + (16 << 20)), caps["vmem_cap"]))

    hm_halo, hm_main = _build_filter_mats(h, halo, n_sub, cdt)

    c = t_tile // halo
    num_sub = t_tile // n_sub

    kernel = functools.partial(
        _fir_kernel, n_sub=n_sub, halo=halo, t_tile=t_tile, t_total=T, cdt=cdt)

    flops = int(grid_b * n_tt * num_sub
                * (2 * b_tile * n_sub * n_sub + 2 * b_tile * halo * w_h))
    bytes_accessed = int(2 * B * T * isz                 # read x + write y
                         + B * halo * n_tt * isz         # halo re-reads
                         + (halo * w_h + n_sub * n_sub) * csz)

    y2 = pl.pallas_call(
        kernel,
        out_shape=jax.ShapeDtypeStruct((B, T), io_dtype),
        grid=(grid_b, n_tt),
        in_specs=[
            pl.BlockSpec((halo, w_h), lambda i, j: (0, 0)),
            pl.BlockSpec((n_sub, n_sub), lambda i, j: (0, 0)),
            # Last `halo` columns of the previous time tile (clamped at j == 0,
            # where the kernel discards the contribution with a select).
            pl.BlockSpec((b_tile, halo),
                         lambda i, j: (i, jnp.maximum(j * c - 1, 0))),
            pl.BlockSpec((b_tile, t_tile), lambda i, j: (i, j)),
        ],
        out_specs=pl.BlockSpec((b_tile, t_tile), lambda i, j: (i, j)),
        compiler_params=pltpu.CompilerParams(
            dimension_semantics=("parallel", "parallel"),
            vmem_limit_bytes=vmem_limit),
        cost_estimate=pl.CostEstimate(
            flops=flops, transcendentals=0, bytes_accessed=bytes_accessed),
    )(hm_halo, hm_main, x2, x2)

    y = y2.reshape(orig_shape)
    if jnp.issubdtype(orig_dtype, jnp.floating) and y.dtype != orig_dtype:
        y = y.astype(orig_dtype)
    return y


# ---------------------------------------------------------------------------
# Module-equivalent wrapper.
# ---------------------------------------------------------------------------
class InfiniteImpulseResponseDigitalFilter:
    def __init__(self, b=None, a=None, ir_length=None, mode="fir",
                 bf16_compute=False):
        self.mode = mode
        self.bf16_compute = bf16_compute
        if b is None:
            b = [1]
        if a is None:
            a = [1]
        if mode == "fir":
            if ir_length is None:
                ir_length = len(b)
            self.h = compute_impulse_response(b, a, ir_length)  # np.float64 (L,)
        elif mode == "iir":
            # TODO(synk): true 'iir' mode calls an external sequential `iir()`
            # recurrence (not part of this module's code); not implemented.
            raise NotImplementedError("only 'fir' mode is implemented")
        else:
            raise ValueError(f"mode {mode} is not supported")

    def __call__(self, x, b=None, a=None):
        assert self.mode == "fir"
        if a is not None:
            raise ValueError("Denominator coefficients must be set via constructor")
        h = self.h if b is None else np.asarray(b, dtype=np.float64)
        return _fir_filter(x, h, bf16_compute=self.bf16_compute)


# ---------------------------------------------------------------------------
# Pure-numpy (float64) reference for verification.
# ---------------------------------------------------------------------------
def fir_reference(x, h):
    x64 = np.asarray(x).astype(np.float64)
    h64 = np.asarray(h, dtype=np.float64)
    T = x64.shape[-1]
    flat = x64.reshape(-1, T)
    out = np.stack([np.convolve(row, h64)[:T] for row in flat], axis=0)
    return out.reshape(x64.shape)


if __name__ == "__main__":
    key = jax.random.PRNGKey(0)
    k1, k2, k3, k4 = jax.random.split(key, 4)

    # 1) Small (..., T) input: single ragged tile, halo fully suppressed (j == 0),
    #    boundary-column masking inside the first sub-block.
    dfs = InfiniteImpulseResponseDigitalFilter(
        b=[0.42, 0.5, 0.08], a=[1.0, -0.97, 0.1], ir_length=16, mode="fir")
    x1 = jax.random.normal(k1, (2, 4, 16), dtype=jnp.float32)
    y1 = jax.block_until_ready(dfs(x1))
    np.testing.assert_allclose(np.asarray(y1), fir_reference(x1, dfs.h),
                               rtol=1e-4, atol=1e-4)

    # 2) Long, non-multiple-of-128 length: multiple time tiles, cross-tile halo,
    #    ragged last tile handled in-kernel (no HBM pad / slice round trips).
    dfs2 = InfiniteImpulseResponseDigitalFilter(
        b=[0.3, 0.2, -0.1, 0.05], a=[1.0, -0.9, 0.15], ir_length=40, mode="fir")
    x2 = jax.random.normal(k2, (3, 2500), dtype=jnp.float32)
    y2 = jax.block_until_ready(dfs2(x2))
    np.testing.assert_allclose(np.asarray(y2), fir_reference(x2, dfs2.h),
                               rtol=1e-4, atol=1e-4)

    # 3) bf16 input stays bf16 through HBM (f32 accumulation, bf16 output).
    x3 = jax.random.normal(k3, (2, 300), dtype=jnp.bfloat16)
    y3 = jax.block_until_ready(dfs(x3))
    assert y3.dtype == jnp.bfloat16
    np.testing.assert_allclose(np.asarray(y3).astype(np.float64),
                               fir_reference(x3, dfs.h), rtol=1e-1, atol=1e-1)

    # 4) Long impulse response (halo = 256): exercises the multi-block halo
    #    split and cross-tile halo with halo > 128.
    dfs3 = InfiniteImpulseResponseDigitalFilter(
        b=[0.5, 0.3], a=[1.0, -0.95], ir_length=200, mode="fir")
    x4 = jax.random.normal(k4, (2, 3000), dtype=jnp.float32)
    y4 = jax.block_until_ready(dfs3(x4))
    np.testing.assert_allclose(np.asarray(y4), fir_reference(x4, dfs3.h),
                               rtol=1e-4, atol=5e-4)

    print("KERNEL_OK")
</pallas_src>

<mosaic_0001>
module attributes {stable_mosaic.version = 11 : i64} {
  func.func @_fir_kernel(%arg0: i32, %arg1: i32, %arg2: memref<128x128xf32, #tpu.memory_space<vmem>>, %arg3: memref<128x128xf32, #tpu.memory_space<vmem>>, %arg4: memref<8x128xf32, #tpu.memory_space<vmem>>, %arg5: memref<8x128xf32, #tpu.memory_space<vmem>>, %arg6: memref<8x128xf32, #tpu.memory_space<vmem>>) attributes {dimension_semantics = [#tpu.dimension_semantics<parallel>, #tpu.dimension_semantics<parallel>], iteration_bounds = array<i64: 1, 1>, scalar_prefetch = 0 : i64, scratch_operands = 0 : i64, tpu.core_type = #tpu.core_type<tc>, window_params = [{pipeline_mode = #tpu.pipeline_mode<synchronous>, transform_indices = @transform_0, window_bounds = array<i64: 128, 128>}, {pipeline_mode = #tpu.pipeline_mode<synchronous>, transform_indices = @transform_1, window_bounds = array<i64: 128, 128>}, {transform_indices = @transform_2, window_bounds = array<i64: 8, 128>}, {transform_indices = @transform_3, window_bounds = array<i64: 8, 128>}, {transform_indices = @transform_4, window_bounds = array<i64: 8, 128>}]} {
    %c0 = arith.constant 0 : index
    %c0_0 = arith.constant 0 : index
    %0 = vector.load %arg3[%c0, %c0_0] : memref<128x128xf32, #tpu.memory_space<vmem>>, vector<128x128xf32>
    %c0_1 = arith.constant 0 : index
    %c0_2 = arith.constant 0 : index
    %1 = vector.load %arg2[%c0_1, %c0_2] : memref<128x128xf32, #tpu.memory_space<vmem>>, vector<128x128xf32>
    %c0_i32 = arith.constant 0 : i32
    %2 = arith.cmpi sgt, %arg1, %c0_i32 : i32
    %c0_3 = arith.constant 0 : index
    %c0_4 = arith.constant 0 : index
    %3 = vector.load %arg5[%c0_3, %c0_4] : memref<8x128xf32, #tpu.memory_space<vmem>>, vector<8x128xf32>
    %4 = tpu.iota {dimensions = array<i32: 1>} : vector<1x128xi32>
    %c128_i32 = arith.constant 128 : i32
    %5 = arith.muli %arg1, %c128_i32 : i32
    %6 = vector.broadcast %5 : i32 to vector<1x128xi32>
    %7 = arith.addi %4, %6 : vector<1x128xi32>
    %c0_i32_5 = arith.constant 0 : i32
    %8 = vector.broadcast %c0_i32_5 : i32 to vector<1x128xi32>
    %9 = arith.addi %7, %8 : vector<1x128xi32>
    %c16_i32 = arith.constant 16 : i32
    %10 = vector.broadcast %c16_i32 : i32 to vector<1x128xi32>
    %11 = arith.cmpi slt, %9, %10 : vector<1x128xi32>
    %cst = arith.constant 0.000000e+00 : f32
    %12 = vector.broadcast %cst : f32 to vector<8x128xf32>
    %13 = vector.shape_cast %11 : vector<1x128xi1> to vector<1x128xi1>
    %14 = vector.broadcast %13 : vector<1x128xi1> to vector<8x128xi1>
    %15 = arith.select %14, %3, %12 : vector<8x128xi1>, vector<8x128xf32>
    %cst_6 = arith.constant dense<0.000000e+00> : vector<8x128xf32>
    %16 = tpu.matmul %15, %0, %cst_6 {dimension_numbers = #tpu.dot_dimension_numbers<[1], [0], [0], [1], [0, 0, 1, 1], [], []>} : vector<8x128xf32>, vector<128x128xf32>, vector<8x128xf32> -> vector<8x128xf32>
    %c0_7 = arith.constant 0 : index
    %c0_8 = arith.constant 0 : index
    %17 = vector.load %arg4[%c0_7, %c0_8] : memref<8x128xf32, #tpu.memory_space<vmem>>, vector<8x128xf32>
    %cst_9 = arith.constant dense<0.000000e+00> : vector<8x128xf32>
    %18 = tpu.matmul %17, %1, %cst_9 {dimension_numbers = #tpu.dot_dimension_numbers<[1], [0], [0], [1], [0, 0, 1, 1], [], []>} : vector<8x128xf32>, vector<128x128xf32>, vector<8x128xf32> -> vector<8x128xf32>
    %cst_10 = arith.constant 0.000000e+00 : f32
    %19 = vector.broadcast %cst_10 : f32 to vector<8x128xf32>
    %20 = arith.select %2, %18, %19 : vector<8x128xf32>
    %21 = arith.addf %16, %20 : vector<8x128xf32>
    %c0_11 = arith.constant 0 : index
    %c0_12 = arith.constant 0 : index
    %22 = vector.load %arg6[%c0_11, %c0_12] : memref<8x128xf32, #tpu.memory_space<vmem>>, vector<8x128xf32>
    tpu.vector_store %arg6[%c0_11, %c0_12], %21 {strides = array<i32>} : memref<8x128xf32, #tpu.memory_space<vmem>>, vector<8x128xf32>,
    return
  }
  func.func @transform_0(%arg0: i32, %arg1: i32) -> (i32, i32) {
    %c0_i32 = arith.constant 0 : i32
    %c0_i32_0 = arith.constant 0 : i32
    %c0_i32_1 = arith.constant 0 : i32
    return %c0_i32, %c0_i32_0 : i32, i32
  }
  func.func @transform_1(%arg0: i32, %arg1: i32) -> (i32, i32) {
    %c0_i32 = arith.constant 0 : i32
    %c0_i32_0 = arith.constant 0 : i32
    %c0_i32_1 = arith.constant 0 : i32
    return %c0_i32, %c0_i32_0 : i32, i32
  }
  func.func @transform_2(%arg0: i32, %arg1: i32) -> (i32, i32) {
    %c1_i32 = arith.constant 1 : i32
    %0 = arith.muli %arg1, %c1_i32 : i32
    %c1_i32_0 = arith.constant 1 : i32
    %1 = arith.subi %0, %c1_i32_0 : i32
    %c0_i32 = arith.constant 0 : i32
    %2 = arith.maxsi %1, %c0_i32 : i32
    %c0_i32_1 = arith.constant 0 : i32
    return %arg0, %2 : i32, i32
  }
  func.func @transform_3(%arg0: i32, %arg1: i32) -> (i32, i32) {
    %c0_i32 = arith.constant 0 : i32
    return %arg0, %arg1 : i32, i32
  }
  func.func @transform_4(%arg0: i32, %arg1: i32) -> (i32, i32) {
    %c0_i32 = arith.constant 0 : i32
    return %arg0, %arg1 : i32, i32
  }
}

</mosaic_0001>

<bundles_post_ra>
// kernel: tpu_custom_call.1
= control target key start
LH: loop header
LB: loop body
LE: loop exit
PB: predicated region body
PF: predicated region fallthrough
CT: control target
= control target key end

     0   :  { %9 = vsyncpa [#allocation3], 0  ;;  %s636_s0 = inlined_call_operand.hbm [shape: f32[128,128], index: 0, kind: input, shape index: {}]   ;;  %s637_s1 = inlined_call_operand.hbm [shape: f32[128,128], index: 1, kind: input, shape index: {}]   ;;  %s638_s2 = inlined_call_operand.hbm [shape: f32[8,16], index: 2, kind: input, shape index: {}]   ;;  %s639_s3 = inlined_call_operand.vmem [shape: f32[8,16], index: 3, kind: input, shape index: {}]   ;;  %s640_s4 = inlined_call_operand.hbm [shape: f32[8,16], index: 4, kind: output, shape index: {}]  }
   0x1   :  { %10 = vsyncpa [#allocation6], 0 }
   0x2   :  { %11 = vsyncpa [#allocation4], 0  ;;  %s528_s15 = smov [#allocation5]   ;;  %s529_s17 = smov [#allocation2]  }
   0x3   :  { %s29_s16 = sshll.u32 %s528_s15, 4  ;;  %s17_s18 = sshll.u32 %s529_s17, 4  ;;  %s30_s16 = int_to_ptr.vmem [resolvable:$true] %s29_s16  ;;  %s562_s18 = int_to_ptr.vmem [resolvable:$true] %s17_s18 }
   0x4   :  { %s434_s21 = scalar_lea.hbm %s637_s1, 2048 }
   0x5   :  { %p435_p0 = scmp.ne.s32.totalorder %s637_s1, %s434_s21  ;;  %p438_p1 = scmp.lt.u32.totalorder %s434_s21, %s637_s1 }
   0x7   :  { %p440_p2 = pnand %p438_p1, %p435_p0 }
   0x9   :  { %443 = shalt.err (!%p440_p2)
}
   0xa   :  { %s444_s26 = scalar_lea.vmem %s30_s16, 2048  ;;  %p449_p4 = scmp.lt.s32.totalorder %s30_s16, %s30_s16 }
   0xb   :  { %p445_p3 = scmp.ne.s32.totalorder %s30_s16, %s444_s26  ;;  %p450_p5 = scmp.lt.s32.totalorder %s444_s26, %s444_s26 }
   0xd   :  { %p451_p6 = por %p450_p5, %p449_p4 }
   0xf   :  { %p452_p7 = pnand %p451_p6, %p445_p3 }
  0x11   :  { %455 = shalt.err (!%p452_p7)
}
  0x12   :  { %s530_s27 = smov 128   ;;  %s531_s28 = smov 8  }
  0x13   :  { %35 = dma.hbm_to_vmem [thread:$0]  %s637_s1, 2048, %s30_s16, [#allocation6], %s530_s27, %s530_s27, %s531_s28  }
  0x14   :  { %s456_s7 = scalar_lea.hbm %s636_s0, 2048 }
  0x15   :  { %p457_p8 = scmp.ne.s32.totalorder %s636_s0, %s456_s7  ;;  %p460_p9 = scmp.lt.u32.totalorder %s456_s7, %s636_s0 }
  0x17   :  { %p462_p10 = pnand %p460_p9, %p457_p8 }
  0x19   :  { %465 = shalt.err (!%p462_p10)
}
  0x1a   :  { %s466_s12 = scalar_lea.vmem %s562_s18, 2048  ;;  %p471_p12 = scmp.lt.s32.totalorder %s562_s18, %s562_s18 }
  0x1b   :  { %p467_p11 = scmp.ne.s32.totalorder %s562_s18, %s466_s12  ;;  %p472_p13 = scmp.lt.s32.totalorder %s466_s12, %s466_s12 }
  0x1d   :  { %p473_p0 = por %p472_p13, %p471_p12 }
  0x1f   :  { %p474_p1 = pnand %p473_p0, %p467_p11 }
  0x21   :  { %477 = shalt.err (!%p474_p1)
}
  0x22   :  { %23 = dma.hbm_to_vmem [thread:$0]  %s636_s0, 2048, %s562_s18, [#allocation3], %s530_s27, %s530_s27, %s531_s28  }
  0x23   :  { %s532_s14 = smov [#allocation7]   ;;  %s478_s19 = scalar_lea.hbm %s638_s2, 128 }
  0x24   :  { %s47_s15 = sshll.u32 %s532_s14, 4  ;;  %p479_p2 = scmp.ne.s32.totalorder %s638_s2, %s478_s19  ;;  %s48_s15 = int_to_ptr.vmem [resolvable:$true] %s47_s15 }
  0x25   :  { %p482_p3 = scmp.lt.u32.totalorder %s478_s19, %s638_s2 }
  0x27   :  { %p484_p4 = pnand %p482_p3, %p479_p2 }
  0x29   :  { %487 = shalt.err (!%p484_p4)
}
  0x2a   :  { %s488_s24 = scalar_lea.vmem %s48_s15, 128  ;;  %p493_p6 = scmp.lt.s32.totalorder %s48_s15, %s48_s15 }
  0x2b   :  { %p489_p5 = scmp.ne.s32.totalorder %s48_s15, %s488_s24  ;;  %p494_p7 = scmp.lt.s32.totalorder %s488_s24, %s488_s24 }
  0x2d   :  { %p495_p8 = por %p494_p7, %p493_p6 }
  0x2f   :  { %p496_p9 = pnand %p495_p8, %p489_p5 }
  0x31   :  { %499 = shalt.err (!%p496_p9)
}
  0x32   :  { %50 = dma.hbm_to_vmem [thread:$0]  %s638_s2, 128, %s48_s15, [#allocation6]  }
  0x33   :  { %522 = dma.done.wait [#allocation3], 2048  }
  0x34   :  { %523 = vsyncadd [#allocation3], 4294965248 }
  0x35   :  { %524 = dma.done.wait [#allocation6], 2176  }
  0x36   :  { %525 = vsyncadd [#allocation6], 4294965120  ;;  %v533_v0 = vmov 0.0|0.0   ;;  %vm534_vm0 = vmmov 0   ;;  %v535_v1 = vmov 0.0   ;;  %v81_v2 = vld [vmem:[#allocation2] sm:$0xff]  ;;  %v99_v46 = vlaneseq }
  0x37   :  { %377 = vmatprep.subr.bf16.mxu0 %v533_v0  ;;  %401 = vmatprep.subr.bf16.mxu1 %v533_v0  ;;  %v82_v3 = vld [vmem:[#allocation2 + $0x8] sm:$0xff]  ;;  %v65_v4 = vld [vmem:[#allocation5] sm:$0xff]  ;;  %v83_v7 = vld [vmem:[#allocation2 + $0x10] sm:$0xff]  ;;  %s536_s26 = smov [#allocation8]  }
  0x38   :  { %339 = vmatprep.mubr.msk.f32.mxu0 %vm534_vm0, %v535_v1  ;;  %374 = vmatprep.mubr.msk.f32.mxu1 %vm534_vm0, %v535_v1  ;;  %v378_v5 = vpack.c.bf16 %v82_v3, %v81_v2  ;;  %v66_v6 = vld [vmem:[#allocation5 + $0x8] sm:$0xff]  ;;  %v84_v8 = vld [vmem:[#allocation2 + $0x18] sm:$0xff]  ;;  %v67_v10 = vld [vmem:[#allocation5 + $0x10] sm:$0xff]  ;;  %v100_v51 = vand.u32 127, %v99_v46  ;;  %s260_s27 = sshll.u32 %s536_s26, 4  ;;  %s261_s27 = int_to_ptr.vmem [resolvable:$true] %s260_s27 }
  0x39   :  { %v402_v9 = vpack.c.bf16 %v66_v6, %v65_v4  ;;  %v68_v11 = vld [vmem:[#allocation5 + $0x18] sm:$0xff]  ;;  %v381_v12 = vpack.c.bf16 %v84_v8, %v83_v7  ;;  %v85_v14 = vld [vmem:[#allocation2 + $0x20] sm:$0xff]  ;;  %v86_v15 = vld [vmem:[#allocation2 + $0x28] sm:$0xff]  ;;  %s500_s28 = scalar_lea.vmem %s261_s27, 128  ;;  %p505_p11 = scmp.lt.s32.totalorder %s261_s27, %s261_s27 }
  0x3a   :  { %379 = vmatpush3.bf16.msra.mxu0 %v378_v5  ;;  %v405_v13 = vpack.c.bf16 %v68_v11, %v67_v10  ;;  %v69_v16 = vld [vmem:[#allocation5 + $0x20] sm:$0xff]  ;;  %v70_v17 = vld [vmem:[#allocation5 + $0x28] sm:$0xff]  ;;  %v384_v18 = vpack.c.bf16 %v86_v15, %v85_v14  ;;  %v87_v20 = vld [vmem:[#allocation2 + $0x30] sm:$0xff]  ;;  %vm104_vm1 = vcmp.lt.s32.totalorder %v100_v51, 16  ;;  %p501_p10 = scmp.ne.s32.totalorder %s261_s27, %s500_s28  ;;  %p506_p12 = scmp.lt.s32.totalorder %s500_s28, %s500_s28 }
  0x3b   :  { %403 = vmatpush3.bf16.msra.mxu1 %v402_v9  ;;  %380 = vmatprep.subr.bf16.mxu0 %v533_v0  ;;  %v408_v19 = vpack.c.bf16 %v70_v17, %v69_v16  ;;  %v88_v21 = vld [vmem:[#allocation2 + $0x38] sm:$0xff]  ;;  %v71_v22 = vld [vmem:[#allocation5 + $0x30] sm:$0xff]  ;;  %v89_v26 = vld [vmem:[#allocation2 + $0x40] sm:$0xff] }
  0x3c   :  { %404 = vmatprep.subr.bf16.mxu1 %v533_v0  ;;  %v72_v23 = vld [vmem:[#allocation5 + $0x38] sm:$0xff]  ;;  %v387_v24 = vpack.c.bf16 %v88_v21, %v87_v20  ;;  %v90_v27 = vld [vmem:[#allocation2 + $0x48] sm:$0xff]  ;;  %v73_v28 = vld [vmem:[#allocation5 + $0x40] sm:$0xff]  ;;  %p507_p13 = por %p506_p12, %p505_p11 }
  0x3d   :  { %v411_v25 = vpack.c.bf16 %v72_v23, %v71_v22  ;;  %v74_v29 = vld [vmem:[#allocation5 + $0x48] sm:$0xff]  ;;  %v390_v30 = vpack.c.bf16 %v90_v27, %v89_v26  ;;  %v91_v32 = vld [vmem:[#allocation2 + $0x50] sm:$0xff]  ;;  %v92_v33 = vld [vmem:[#allocation2 + $0x58] sm:$0xff] }
  0x3e   :  { %382 = vmatpush3.bf16.msra.mxu0 %v381_v12  ;;  %v414_v31 = vpack.c.bf16 %v74_v29, %v73_v28  ;;  %v75_v34 = vld [vmem:[#allocation5 + $0x50] sm:$0xff]  ;;  %v76_v35 = vld [vmem:[#allocation5 + $0x58] sm:$0xff]  ;;  %v393_v36 = vpack.c.bf16 %v92_v33, %v91_v32  ;;  %v93_v38 = vld [vmem:[#allocation2 + $0x60] sm:$0xff]  ;;  %p508_p0 = pnand %p507_p13, %p501_p10 }
  0x3f   :  { %406 = vmatpush3.bf16.msra.mxu1 %v405_v13  ;;  %383 = vmatprep.subr.bf16.mxu0 %v533_v0  ;;  %v417_v37 = vpack.c.bf16 %v76_v35, %v75_v34  ;;  %v94_v39 = vld [vmem:[#allocation2 + $0x68] sm:$0xff]  ;;  %v77_v40 = vld [vmem:[#allocation5 + $0x60] sm:$0xff]  ;;  %v95_v44 = vld [vmem:[#allocation2 + $0x70] sm:$0xff] }
  0x40   :  { %407 = vmatprep.subr.bf16.mxu1 %v533_v0  ;;  %v78_v41 = vld [vmem:[#allocation5 + $0x68] sm:$0xff]  ;;  %v396_v42 = vpack.c.bf16 %v94_v39, %v93_v38  ;;  %v96_v45 = vld [vmem:[#allocation2 + $0x78] sm:$0xff]  ;;  %v79_v47 = vld [vmem:[#allocation5 + $0x70] sm:$0xff] }
  0x41   :  { %v420_v43 = vpack.c.bf16 %v78_v41, %v77_v40  ;;  %v80_v48 = vld [vmem:[#allocation5 + $0x78] sm:$0xff]  ;;  %v399_v49 = vpack.c.bf16 %v96_v45, %v95_v44  ;;  %v108_v52 = vld [vmem:[#allocation7] sm:$0xff] }
  0x42   :  { %385 = vmatpush3.bf16.msra.mxu0 %v384_v18  ;;  %v423_v50 = vpack.c.bf16 %v80_v48, %v79_v47  ;;  %v98_v53 = vld [vmem:[%s639_s3] sm:$0xff] }
  0x43   :  { %409 = vmatpush3.bf16.msra.mxu1 %v408_v19  ;;  %386 = vmatprep.subr.bf16.mxu0 %v533_v0 }
  0x44   :  { %410 = vmatprep.subr.bf16.mxu1 %v533_v0 }
  0x46   :  { %388 = vmatpush3.bf16.msra.mxu0 %v387_v24 }
  0x47   :  { %412 = vmatpush3.bf16.msra.mxu1 %v411_v25  ;;  %389 = vmatprep.subr.bf16.mxu0 %v533_v0 }
  0x48   :  { %413 = vmatprep.subr.bf16.mxu1 %v533_v0 }
  0x4a   :  { %391 = vmatpush3.bf16.msra.mxu0 %v390_v30 }
  0x4b   :  { %415 = vmatpush3.bf16.msra.mxu1 %v414_v31  ;;  %392 = vmatprep.subr.bf16.mxu0 %v533_v0 }
  0x4c   :  { %416 = vmatprep.subr.bf16.mxu1 %v533_v0 }
  0x4e   :  { %394 = vmatpush3.bf16.msra.mxu0 %v393_v36 }
  0x4f   :  { %418 = vmatpush3.bf16.msra.mxu1 %v417_v37  ;;  %395 = vmatprep.subr.bf16.mxu0 %v533_v0 }
  0x50   :  { %419 = vmatprep.subr.bf16.mxu1 %v533_v0 }
  0x52   :  { %397 = vmatpush3.bf16.msra.mxu0 %v396_v42 }
  0x53   :  { %421 = vmatpush3.bf16.msra.mxu1 %v420_v43  ;;  %398 = vmatprep.subr.bf16.mxu0 %v533_v0 }
  0x54   :  { %422 = vmatprep.subr.bf16.mxu1 %v533_v0 }
  0x56   :  { %400 = vmatpush3.bf16.msra.mxu0 %v399_v49 }
  0x57   :  { %424 = vmatpush3.bf16.msra.mxu1 %v423_v50 }
  0x59   :  { %340 = vmatmul.mubr.f32.vlgmr.msra.gmra.mrb[0].mxu0 %v108_v52 }
  0x5a   :  { %375 = vmatmul.mubr.msk.f32.vlgmr.msra.gmra.mrb[0].mxu1 %vm104_vm1, %v98_v53 }
 0x12c   :  { %v175_v54 = vpop.f32.mrb[0].mxu0 }
 0x12d   :  { %v249_v55 = vpop.f32.mrb[0].mxu1  ;;  %v341_v56 = vpop.f32.mrb[1].mxu0 }
 0x12e   :  { %253 = vst [vmem:[#allocation8] sm:$0xff] %v249_v55  ;;  %v376_v57 = vpop.f32.mrb[1].mxu1 }
 0x12f   :  { %511 = shalt.err (!%p508_p0)
}
 0x130   :  { %s512_s30 = scalar_lea.hbm %s640_s4, 128 }
 0x131   :  { %p513_p1 = scmp.ne.s32.totalorder %s640_s4, %s512_s30  ;;  %p516_p2 = scmp.lt.u32.totalorder %s512_s30, %s640_s4 }
 0x133   :  { %p518_p3 = pnand %p516_p2, %p513_p1 }
 0x135   :  { %521 = shalt.err (!%p518_p3)
}
 0x136   :  { %263 = dma.vmem_to_hbm [thread:$0]  %s261_s27, 128, %s640_s4, [#allocation4]  }
 0x137   :  { %526 = dma.done.wait [#allocation4], 128  }
 0x138   :  { %527 = vsyncadd [#allocation4], 4294967168 }
 0x139   :  { %267 = vsyncpa [#allocation3], 1 }
 0x13a   :  { %268 = vsyncpa [#allocation6], 1 }
 0x13b   :  { %269 = vsyncpa [#allocation4], 1 }

</bundles_post_ra>
